<compile_context>
chip_gen: v5e
topology: v5e:2x2
jax: 0.10.0
libtpu: 0.0.40
codegen_flags: <defaults>
</compile_context>

<pallas_src>
import jax
import jax.numpy as jnp
from jax.experimental import pallas as pl
from jax.experimental.pallas import tpu as pltpu

LANE = 128            # padded width of the final layer (lane-dense output)
NEG_SENTINEL = -1e30  # finite "minus infinity" for padded logits


def _leaky_relu(x, slope=0.1):
    # slope < 1  =>  max(x, slope*x) == LeakyReLU(x); 2 VALU ops instead of 3.
    return jnp.maximum(x, slope * x)


def policy_net_kernel(x_ref,
                      w1_ref, b1_ref,
                      w2_ref, b2_ref,
                      w3_ref, b3_ref,
                      w4_ref, b4_ref,
                      o_ref):
    """Whole forward pass for one batch tile: 4 matmuls + LeakyReLU + softmax."""
    # x arrives as f32 (no wrapper-side cast/pad pass); cast to bf16 here for the MXU.
    x = x_ref[...].astype(w1_ref.dtype)

    # MXU matmuls take bf16 operands, accumulate in f32; biases/activations in f32,
    # re-cast to bf16 only at the next matmul's input.
    h = jnp.dot(x, w1_ref[...], preferred_element_type=jnp.float32) + b1_ref[...]
    h = _leaky_relu(h).astype(w2_ref.dtype)

    h = jnp.dot(h, w2_ref[...], preferred_element_type=jnp.float32) + b2_ref[...]
    h = _leaky_relu(h).astype(w3_ref.dtype)

    h = jnp.dot(h, w3_ref[...], preferred_element_type=jnp.float32) + b3_ref[...]
    h = _leaky_relu(h).astype(w4_ref.dtype)

    # Final linear: padded lanes carry bias = -1e30 -> exp() underflows to exactly 0,
    # so the softmax denominator only sums the real n logits.
    logits = jnp.dot(h, w4_ref[...], preferred_element_type=jnp.float32) + b4_ref[...]

    m = jnp.max(logits, axis=-1, keepdims=True)
    e = jnp.exp(logits - m)
    denom = jnp.sum(e, axis=-1, keepdims=True)
    # Exact normalization: one f32 divide per row (tile_b elements), then a
    # broadcast multiply.  (The previous approx reciprocal broke sum-to-1.)
    probs = e * (1.0 / denom)
    o_ref[...] = probs.astype(o_ref.dtype)


def _round_up(v, m):
    return ((v + m - 1) // m) * m


def _choose_tile_b(B):
    """Batch tile: multiple of 16 rows (bf16 sublane packing), <= 2048 rows, with an
    even grid of >= 4 steps once the batch is large enough (so v7x's two TensorCores
    each get whole, pipelined steps)."""
    if B <= 16:
        return 16
    n_steps = max(2, pl.cdiv(B, 2048))
    if n_steps % 2:
        n_steps += 1
    if n_steps < 4 and B > 4 * 16:
        n_steps = 4
    return _round_up(pl.cdiv(B, n_steps), 16)


def policy_net_forward(x, params, *, n, tile_b=None,
                       compute_dtype=jnp.bfloat16, out_dtype=jnp.bfloat16):
    """x: (B, in_dims) float32.  Returns softmax probabilities (B, n) float32."""
    w1, b1, w2, b2, w3, b3, w4, b4 = params
    B, in_dims = x.shape
    H = w1.shape[1]  # 128
    assert n <= LANE

    # Pad final layer to LANE columns: weights with 0, bias with a finite sentinel.
    w4_p = jnp.zeros((H, LANE), jnp.float32).at[:, :n].set(w4)
    b4_p = jnp.full((1, LANE), NEG_SENTINEL, jnp.float32).at[:, :n].set(
        b4.reshape(1, n))

    # Weights in bf16 for the MXU (tiny, one-time cast); biases stay f32 (added to
    # the f32 accumulator).  x is NOT cast here -- the kernel casts it in VMEM.
    w1_c = w1.astype(compute_dtype)
    w2_c = w2.astype(compute_dtype)
    w3_c = w3.astype(compute_dtype)
    w4_c = w4_p.astype(compute_dtype)

    b1_2d = b1.reshape(1, H).astype(jnp.float32)
    b2_2d = b2.reshape(1, H).astype(jnp.float32)
    b3_2d = b3.reshape(1, H).astype(jnp.float32)

    if tile_b is None:
        tile_b = _choose_tile_b(B)
    tile_b = max(16, _round_up(tile_b, 16))

    # No wrapper-side padding: ragged last block handled by masked OOB semantics.
    grid = (pl.cdiv(B, tile_b),)

    # Advisory cost estimate for XLA scheduling.
    out_bytes_per_elem = jnp.dtype(out_dtype).itemsize
    flops = 2 * B * (in_dims * H + 2 * H * H + H * LANE)
    weight_bytes = 2 * (in_dims * H + 2 * H * H + H * LANE)  # bf16 weights
    bias_bytes = 4 * (3 * H + LANE)
    bytes_accessed = (B * in_dims * 4            # x read (f32)
                      + B * LANE * out_bytes_per_elem
                      + weight_bytes + bias_bytes)
    cost = pl.CostEstimate(flops=flops,
                           transcendentals=B * LANE,
                           bytes_accessed=bytes_accessed)

    # Weights/biases: constant index_map + full-array block_shape -> resident in
    # VMEM across grid steps (no per-step re-DMA).
    def resident(shape):
        ndim = len(shape)
        return pl.BlockSpec(shape, lambda i, _n=ndim: (0,) * _n)

    out = pl.pallas_call(
        policy_net_kernel,
        out_shape=jax.ShapeDtypeStruct((B, LANE), out_dtype),
        grid_spec=pltpu.PrefetchScalarGridSpec(
            num_scalar_prefetch=0,
            grid=grid,
            in_specs=[
                pl.BlockSpec((tile_b, in_dims), lambda i: (i, 0)),   # x tile (f32)
                resident((in_dims, H)), resident((1, H)),            # fc1
                resident((H, H)),       resident((1, H)),            # fc2
                resident((H, H)),       resident((1, H)),            # fc3
                resident((H, LANE)),    resident((1, LANE)),         # fc4 (padded)
            ],
            out_specs=pl.BlockSpec((tile_b, LANE), lambda i: (i, 0)),
        ),
        compiler_params=pltpu.CompilerParams(
            dimension_semantics=("parallel",)),
        cost_estimate=cost,
    )(x, w1_c, b1_2d, w2_c, b2_2d, w3_c, b3_2d, w4_c, b4_p)

    # Only the tiny (B, n) slice is touched here; cast back to f32 for the caller.
    return out[:, :n].astype(jnp.float32)


def init_params(key, in_dims=128, hidden=128, n=4):
    """Deterministic init mimicking PyTorch Linear's U(-1/sqrt(fan_in), 1/sqrt(fan_in))."""
    keys = jax.random.split(key, 8)

    def linear(kw, kb, fan_in, fan_out):
        bound = 1.0 / jnp.sqrt(fan_in)
        w = jax.random.uniform(kw, (fan_in, fan_out), jnp.float32, -bound, bound)
        b = jax.random.uniform(kb, (fan_out,), jnp.float32, -bound, bound)
        return w, b

    w1, b1 = linear(keys[0], keys[1], in_dims, hidden)
    w2, b2 = linear(keys[2], keys[3], hidden, hidden)
    w3, b3 = linear(keys[4], keys[5], hidden, hidden)
    w4, b4 = linear(keys[6], keys[7], hidden, n)
    return (w1, b1, w2, b2, w3, b3, w4, b4)


def reference_forward(x, params, n):
    """Pure-JAX f32 reference for correctness check."""
    w1, b1, w2, b2, w3, b3, w4, b4 = params
    lrelu = lambda v: jnp.where(v > 0, v, 0.1 * v)
    h = lrelu(x @ w1 + b1)
    h = lrelu(h @ w2 + b2)
    h = lrelu(h @ w3 + b3)
    logits = h @ w4 + b4
    return jax.nn.softmax(logits, axis=-1)


if __name__ == "__main__":
    key = jax.random.PRNGKey(0)
    k_param, k_x1, k_x2 = jax.random.split(key, 3)

    n, in_dims = 4, 128
    params = init_params(k_param, in_dims=in_dims, hidden=128, n=n)

    # Case 1: batch equal to one full tile (16 rows, grid length 1).
    x1 = jax.random.normal(k_x1, (16, in_dims), jnp.float32)
    p1 = jax.block_until_ready(policy_net_forward(x1, params, n=n))
    r1 = reference_forward(x1, params, n)
    assert p1.shape == (16, n), p1.shape
    # bf16 output rounding -> probabilities sum to 1 within ~4e-3.
    assert jnp.allclose(jnp.sum(p1, axis=-1), 1.0, atol=1e-2)
    assert jnp.allclose(p1, r1, atol=3e-2, rtol=3e-2)

    # Case 2: ragged batch (40 rows) -> masked last tile, no wrapper-side padding.
    x2 = jax.random.normal(k_x2, (40, in_dims), jnp.float32)
    p2 = jax.block_until_ready(policy_net_forward(x2, params, n=n))
    r2 = reference_forward(x2, params, n)
    assert p2.shape == (40, n), p2.shape
    assert jnp.allclose(jnp.sum(p2, axis=-1), 1.0, atol=1e-2)
    assert jnp.allclose(p2, r2, atol=3e-2, rtol=3e-2)

    print("KERNEL_OK")
</pallas_src>

<mosaic_0001>
module attributes {stable_mosaic.version = 11 : i64} {
  func.func @policy_net_kernel(%arg0: i32, %arg1: memref<16x128xf32, #tpu.memory_space<vmem>>, %arg2: memref<128x128xbf16, #tpu.memory_space<vmem>>, %arg3: memref<1x128xf32, #tpu.memory_space<vmem>>, %arg4: memref<128x128xbf16, #tpu.memory_space<vmem>>, %arg5: memref<1x128xf32, #tpu.memory_space<vmem>>, %arg6: memref<128x128xbf16, #tpu.memory_space<vmem>>, %arg7: memref<1x128xf32, #tpu.memory_space<vmem>>, %arg8: memref<128x128xbf16, #tpu.memory_space<vmem>>, %arg9: memref<1x128xf32, #tpu.memory_space<vmem>>, %arg10: memref<16x128xbf16, #tpu.memory_space<vmem>>) attributes {dimension_semantics = [#tpu.dimension_semantics<parallel>], iteration_bounds = array<i64: 1>, scalar_prefetch = 0 : i64, scratch_operands = 0 : i64, tpu.core_type = #tpu.core_type<tc>, window_params = [{transform_indices = @transform_0, window_bounds = array<i64: 16, 128>}, {pipeline_mode = #tpu.pipeline_mode<synchronous>, transform_indices = @transform_1, window_bounds = array<i64: 128, 128>}, {pipeline_mode = #tpu.pipeline_mode<synchronous>, transform_indices = @transform_2, window_bounds = array<i64: 1, 128>}, {pipeline_mode = #tpu.pipeline_mode<synchronous>, transform_indices = @transform_3, window_bounds = array<i64: 128, 128>}, {pipeline_mode = #tpu.pipeline_mode<synchronous>, transform_indices = @transform_4, window_bounds = array<i64: 1, 128>}, {pipeline_mode = #tpu.pipeline_mode<synchronous>, transform_indices = @transform_5, window_bounds = array<i64: 128, 128>}, {pipeline_mode = #tpu.pipeline_mode<synchronous>, transform_indices = @transform_6, window_bounds = array<i64: 1, 128>}, {pipeline_mode = #tpu.pipeline_mode<synchronous>, transform_indices = @transform_7, window_bounds = array<i64: 128, 128>}, {pipeline_mode = #tpu.pipeline_mode<synchronous>, transform_indices = @transform_8, window_bounds = array<i64: 1, 128>}, {transform_indices = @transform_9, window_bounds = array<i64: 16, 128>}]} {
    %c0 = arith.constant 0 : index
    %c0_0 = arith.constant 0 : index
    %0 = vector.load %arg1[%c0, %c0_0] : memref<16x128xf32, #tpu.memory_space<vmem>>, vector<16x128xf32>
    %1 = arith.truncf %0 : vector<16x128xf32> to vector<16x128xbf16>
    %c0_1 = arith.constant 0 : index
    %c0_2 = arith.constant 0 : index
    %2 = vector.load %arg2[%c0_1, %c0_2] : memref<128x128xbf16, #tpu.memory_space<vmem>>, vector<128x128xbf16>
    %cst = arith.constant dense<0.000000e+00> : vector<16x128xf32>
    %3 = tpu.matmul %1, %2, %cst {dimension_numbers = #tpu.dot_dimension_numbers<[1], [0], [0], [1], [0, 0, 1, 1], [], []>} : vector<16x128xbf16>, vector<128x128xbf16>, vector<16x128xf32> -> vector<16x128xf32>
    %c0_3 = arith.constant 0 : index
    %c0_4 = arith.constant 0 : index
    %4 = vector.load %arg3[%c0_3, %c0_4] : memref<1x128xf32, #tpu.memory_space<vmem>>, vector<1x128xf32>
    %5 = vector.broadcast %4 : vector<1x128xf32> to vector<16x128xf32>
    %6 = arith.addf %3, %5 : vector<16x128xf32>
    %cst_5 = arith.constant 1.000000e-01 : f32
    %7 = vector.broadcast %cst_5 : f32 to vector<16x128xf32>
    %8 = arith.mulf %7, %6 : vector<16x128xf32>
    %9 = arith.maximumf %6, %8 : vector<16x128xf32>
    %10 = arith.truncf %9 : vector<16x128xf32> to vector<16x128xbf16>
    %c0_6 = arith.constant 0 : index
    %c0_7 = arith.constant 0 : index
    %11 = vector.load %arg4[%c0_6, %c0_7] : memref<128x128xbf16, #tpu.memory_space<vmem>>, vector<128x128xbf16>
    %cst_8 = arith.constant dense<0.000000e+00> : vector<16x128xf32>
    %12 = tpu.matmul %10, %11, %cst_8 {dimension_numbers = #tpu.dot_dimension_numbers<[1], [0], [0], [1], [0, 0, 1, 1], [], []>} : vector<16x128xbf16>, vector<128x128xbf16>, vector<16x128xf32> -> vector<16x128xf32>
    %c0_9 = arith.constant 0 : index
    %c0_10 = arith.constant 0 : index
    %13 = vector.load %arg5[%c0_9, %c0_10] : memref<1x128xf32, #tpu.memory_space<vmem>>, vector<1x128xf32>
    %14 = vector.broadcast %13 : vector<1x128xf32> to vector<16x128xf32>
    %15 = arith.addf %12, %14 : vector<16x128xf32>
    %cst_11 = arith.constant 1.000000e-01 : f32
    %16 = vector.broadcast %cst_11 : f32 to vector<16x128xf32>
    %17 = arith.mulf %16, %15 : vector<16x128xf32>
    %18 = arith.maximumf %15, %17 : vector<16x128xf32>
    %19 = arith.truncf %18 : vector<16x128xf32> to vector<16x128xbf16>
    %c0_12 = arith.constant 0 : index
    %c0_13 = arith.constant 0 : index
    %20 = vector.load %arg6[%c0_12, %c0_13] : memref<128x128xbf16, #tpu.memory_space<vmem>>, vector<128x128xbf16>
    %cst_14 = arith.constant dense<0.000000e+00> : vector<16x128xf32>
    %21 = tpu.matmul %19, %20, %cst_14 {dimension_numbers = #tpu.dot_dimension_numbers<[1], [0], [0], [1], [0, 0, 1, 1], [], []>} : vector<16x128xbf16>, vector<128x128xbf16>, vector<16x128xf32> -> vector<16x128xf32>
    %c0_15 = arith.constant 0 : index
    %c0_16 = arith.constant 0 : index
    %22 = vector.load %arg7[%c0_15, %c0_16] : memref<1x128xf32, #tpu.memory_space<vmem>>, vector<1x128xf32>
    %23 = vector.broadcast %22 : vector<1x128xf32> to vector<16x128xf32>
    %24 = arith.addf %21, %23 : vector<16x128xf32>
    %cst_17 = arith.constant 1.000000e-01 : f32
    %25 = vector.broadcast %cst_17 : f32 to vector<16x128xf32>
    %26 = arith.mulf %25, %24 : vector<16x128xf32>
    %27 = arith.maximumf %24, %26 : vector<16x128xf32>
    %28 = arith.truncf %27 : vector<16x128xf32> to vector<16x128xbf16>
    %c0_18 = arith.constant 0 : index
    %c0_19 = arith.constant 0 : index
    %29 = vector.load %arg8[%c0_18, %c0_19] : memref<128x128xbf16, #tpu.memory_space<vmem>>, vector<128x128xbf16>
    %cst_20 = arith.constant dense<0.000000e+00> : vector<16x128xf32>
    %30 = tpu.matmul %28, %29, %cst_20 {dimension_numbers = #tpu.dot_dimension_numbers<[1], [0], [0], [1], [0, 0, 1, 1], [], []>} : vector<16x128xbf16>, vector<128x128xbf16>, vector<16x128xf32> -> vector<16x128xf32>
    %c0_21 = arith.constant 0 : index
    %c0_22 = arith.constant 0 : index
    %31 = vector.load %arg9[%c0_21, %c0_22] : memref<1x128xf32, #tpu.memory_space<vmem>>, vector<1x128xf32>
    %32 = vector.broadcast %31 : vector<1x128xf32> to vector<16x128xf32>
    %33 = arith.addf %30, %32 : vector<16x128xf32>
    %cst_23 = arith.constant dense<0xFF800000> : vector<16xf32>
    %34 = vector.multi_reduction <maximumf>, %33, %cst_23 [1] : vector<16x128xf32> to vector<16xf32>
    %35 = vector.shape_cast %34 : vector<16xf32> to vector<16x1xf32>
    %36 = vector.broadcast %35 : vector<16x1xf32> to vector<16x128xf32>
    %37 = arith.subf %33, %36 : vector<16x128xf32>
    %38 = math.exp %37 : vector<16x128xf32>
    %cst_24 = arith.constant dense<0.000000e+00> : vector<16xf32>
    %39 = vector.multi_reduction <add>, %38, %cst_24 [1] : vector<16x128xf32> to vector<16xf32>
    %40 = vector.shape_cast %39 : vector<16xf32> to vector<16x1xf32>
    %cst_25 = arith.constant 1.000000e+00 : f32
    %41 = vector.broadcast %cst_25 : f32 to vector<16x1xf32>
    %42 = arith.divf %41, %40 : vector<16x1xf32>
    %43 = vector.broadcast %42 : vector<16x1xf32> to vector<16x128xf32>
    %44 = arith.mulf %38, %43 : vector<16x128xf32>
    %45 = arith.truncf %44 : vector<16x128xf32> to vector<16x128xbf16>
    %c0_26 = arith.constant 0 : index
    %c0_27 = arith.constant 0 : index
    %46 = vector.load %arg10[%c0_26, %c0_27] : memref<16x128xbf16, #tpu.memory_space<vmem>>, vector<16x128xbf16>
    tpu.vector_store %arg10[%c0_26, %c0_27], %45 {strides = array<i32>} : memref<16x128xbf16, #tpu.memory_space<vmem>>, vector<16x128xbf16>,
    return
  }
  func.func @transform_0(%arg0: i32) -> (i32, i32) {
    %c0_i32 = arith.constant 0 : i32
    %c0_i32_0 = arith.constant 0 : i32
    return %arg0, %c0_i32 : i32, i32
  }
  func.func @transform_1(%arg0: i32) -> (i32, i32) {
    %c0_i32 = arith.constant 0 : i32
    %c0_i32_0 = arith.constant 0 : i32
    %c0_i32_1 = arith.constant 0 : i32
    return %c0_i32, %c0_i32_0 : i32, i32
  }
  func.func @transform_2(%arg0: i32) -> (i32, i32) {
    %c0_i32 = arith.constant 0 : i32
    %c0_i32_0 = arith.constant 0 : i32
    %c0_i32_1 = arith.constant 0 : i32
    return %c0_i32, %c0_i32_0 : i32, i32
  }
  func.func @transform_3(%arg0: i32) -> (i32, i32) {
    %c0_i32 = arith.constant 0 : i32
    %c0_i32_0 = arith.constant 0 : i32
    %c0_i32_1 = arith.constant 0 : i32
    return %c0_i32, %c0_i32_0 : i32, i32
  }
  func.func @transform_4(%arg0: i32) -> (i32, i32) {
    %c0_i32 = arith.constant 0 : i32
    %c0_i32_0 = arith.constant 0 : i32
    %c0_i32_1 = arith.constant 0 : i32
    return %c0_i32, %c0_i32_0 : i32, i32
  }
  func.func @transform_5(%arg0: i32) -> (i32, i32) {
    %c0_i32 = arith.constant 0 : i32
    %c0_i32_0 = arith.constant 0 : i32
    %c0_i32_1 = arith.constant 0 : i32
    return %c0_i32, %c0_i32_0 : i32, i32
  }
  func.func @transform_6(%arg0: i32) -> (i32, i32) {
    %c0_i32 = arith.constant 0 : i32
    %c0_i32_0 = arith.constant 0 : i32
    %c0_i32_1 = arith.constant 0 : i32
    return %c0_i32, %c0_i32_0 : i32, i32
  }
  func.func @transform_7(%arg0: i32) -> (i32, i32) {
    %c0_i32 = arith.constant 0 : i32
    %c0_i32_0 = arith.constant 0 : i32
    %c0_i32_1 = arith.constant 0 : i32
    return %c0_i32, %c0_i32_0 : i32, i32
  }
  func.func @transform_8(%arg0: i32) -> (i32, i32) {
    %c0_i32 = arith.constant 0 : i32
    %c0_i32_0 = arith.constant 0 : i32
    %c0_i32_1 = arith.constant 0 : i32
    return %c0_i32, %c0_i32_0 : i32, i32
  }
  func.func @transform_9(%arg0: i32) -> (i32, i32) {
    %c0_i32 = arith.constant 0 : i32
    %c0_i32_0 = arith.constant 0 : i32
    return %arg0, %c0_i32 : i32, i32
  }
}

</mosaic_0001>

<bundles_post_ra>
// kernel: tpu_custom_call.1
= control target key start
LH: loop header
LB: loop body
LE: loop exit
PB: predicated region body
PF: predicated region fallthrough
CT: control target
= control target key end

     0   :  { %14 = vsyncpa [#allocation3], 0  ;;  %s972_s0 = inlined_call_operand.hbm [shape: f32[16,128], index: 0, kind: input, shape index: {}]   ;;  %s973_s1 = inlined_call_operand.hbm [shape: bf16[128,128], index: 1, kind: input, shape index: {}]   ;;  %s974_s2 = inlined_call_operand.vmem [shape: f32[1,128], index: 2, kind: input, shape index: {}]   ;;  %s975_s3 = inlined_call_operand.hbm [shape: bf16[128,128], index: 3, kind: input, shape index: {}]   ;;  %s976_s4 = inlined_call_operand.vmem [shape: f32[1,128], index: 4, kind: input, shape index: {}]   ;;  %s977_s5 = inlined_call_operand.hbm [shape: bf16[128,128], index: 5, kind: input, shape index: {}]   ;;  %s978_s6 = inlined_call_operand.vmem [shape: f32[1,128], index: 6, kind: input, shape index: {}]   ;;  %s979_s7 = inlined_call_operand.hbm [shape: bf16[128,128], index: 7, kind: input, shape index: {}]   ;;  %s980_s8 = inlined_call_operand.vmem [shape: f32[1,128], index: 8, kind: input, shape index: {}]   ;;  %s981_s9 = inlined_call_operand.hbm [shape: bf16[16,128], index: 9, kind: output, shape index: {}]  }
   0x1   :  { %15 = vsyncpa [#allocation6], 0 }
   0x2   :  { %16 = vsyncpa [#allocation9], 0  ;;  %s35_s11 = sshll.u32 %s973_s1, 4  ;;  %s36_s11 = int_to_ptr.hbm [resolvable:$true] %s35_s11 }
   0x3   :  { %17 = vsyncpa [#allocation4], 0  ;;  %s867_s12 = smov [#allocation5]   ;;  %s65_s16 = sshll.u32 %s977_s5, 4  ;;  %s66_s16 = int_to_ptr.hbm [resolvable:$true] %s65_s16 }
   0x4   :  { %s37_s13 = sshll.u32 %s867_s12, 4  ;;  %s868_s17 = smov 64   ;;  %s38_s13 = int_to_ptr.vmem [resolvable:$true] %s37_s13 }
   0x5   :  { %s869_s18 = smov 4   ;;  %s870_s19 = smov [#allocation8]  }
   0x6   :  { %43 = dma.hbm_to_vmem [thread:$0]  %s36_s11, 1024, %s38_s13, [#allocation6], %s868_s17, %s868_s17, %s869_s18  }
   0x7   :  { %s67_s20 = sshll.u32 %s870_s19, 4  ;;  %s22_s22 = sshll.u32 %s972_s0, 4  ;;  %s68_s20 = int_to_ptr.vmem [resolvable:$true] %s67_s20  ;;  %s23_s22 = int_to_ptr.hbm [resolvable:$true] %s22_s22 }
   0x8   :  { %73 = dma.hbm_to_vmem [thread:$0]  %s66_s16, 1024, %s68_s20, [#allocation9], %s868_s17, %s868_s17, %s869_s18  }
   0x9   :  { %s871_s5 = smov [#allocation2]   ;;  %s50_s26 = sshll.u32 %s975_s3, 4  ;;  %s51_s26 = int_to_ptr.hbm [resolvable:$true] %s50_s26 }
   0xa   :  { %s24_s23 = sshll.u32 %s871_s5, 4  ;;  %s872_s27 = smov 128   ;;  %s25_s23 = int_to_ptr.vmem [resolvable:$true] %s24_s23 }
   0xb   :  { %s873_s28 = smov 8   ;;  %s874_s29 = smov [#allocation7]  }
   0xc   :  { %30 = dma.hbm_to_vmem [thread:$0]  %s23_s22, 256, %s25_s23, [#allocation3], %s872_s27, %s872_s27, %s873_s28  }
   0xd   :  { %s52_s30 = sshll.u32 %s874_s29, 4  ;;  %s80_s11 = sshll.u32 %s979_s7, 4  ;;  %s53_s30 = int_to_ptr.vmem [resolvable:$true] %s52_s30  ;;  %s81_s11 = int_to_ptr.hbm [resolvable:$true] %s80_s11 }
   0xe   :  { %58 = dma.hbm_to_vmem [thread:$0]  %s51_s26, 1024, %s53_s30, [#allocation6], %s868_s17, %s868_s17, %s869_s18  }
   0xf   :  { %s875_s12 = smov [#allocation10]  }
  0x10   :  { %s82_s13 = sshll.u32 %s875_s12, 4  ;;  %s83_s13 = int_to_ptr.vmem [resolvable:$true] %s82_s13 }
  0x11   :  { %88 = dma.hbm_to_vmem [thread:$0]  %s81_s11, 1024, %s83_s13, [#allocation9], %s868_s17, %s868_s17, %s869_s18  }
  0x12   :  { %859 = dma.done.wait [#allocation3], 256  }
  0x13   :  { %860 = vsyncadd [#allocation3], 4294967040 }
  0x14   :  { %861 = dma.done.wait [#allocation6], 2048  }
  0x15   :  { %862 = vsyncadd [#allocation6], 4294965248 }
  0x16   :  { %863 = dma.done.wait [#allocation9], 2048  }
  0x17   :  { %864 = vsyncadd [#allocation9], 4294965248  ;;  %v663_v0 = vld [vmem:[#allocation5 + $0x38] sm:$0xff]  ;;  %v662_v1 = vld [vmem:[#allocation5 + $0x30] sm:$0xff]  ;;  %s513_s1 = sshll.u32 %s981_s9, 4  ;;  %s514_s1 = int_to_ptr.hbm [resolvable:$true] %s513_s1 }
  0x18   :  { %182 = vmatpush.bf16.msra.mxu0 %v663_v0  ;;  %v671_v2 = vld [vmem:[#allocation7 + $0x38] sm:$0xff]  ;;  %v670_v3 = vld [vmem:[#allocation7 + $0x30] sm:$0xff]  ;;  %v661_v4 = vld [vmem:[#allocation5 + $0x28] sm:$0xff] }
  0x19   :  { %269 = vmatpush.bf16.msra.mxu1 %v671_v2  ;;  %v669_v5 = vld [vmem:[#allocation7 + $0x28] sm:$0xff]  ;;  %v660_v6 = vld [vmem:[#allocation5 + $0x20] sm:$0xff]  ;;  %v659_v8 = vld [vmem:[#allocation5 + $0x18] sm:$0xff] }
  0x1a   :  { %v668_v7 = vld [vmem:[#allocation7 + $0x20] sm:$0xff]  ;;  %v658_v9 = vld [vmem:[#allocation5 + $0x10] sm:$0xff]  ;;  %v657_v10 = vld [vmem:[#allocation5 + $0x8] sm:$0xff] }
  0x1b   :  { %v656_v11 = vld [vmem:[#allocation5] sm:$0xff]  ;;  %v111_v12 = vld [vmem:[#allocation2] sm:$0xff]  ;;  %v112_v13 = vld [vmem:[#allocation2 + $0x8] sm:$0xff] }
  0x1c   :  { %183 = vmatpush.bf16.msra.mxu0 %v662_v1  ;;  %v113_v14 = vpack.c.bf16 %v112_v13, %v111_v12  ;;  %v667_v15 = vld [vmem:[#allocation7 + $0x18] sm:$0xff]  ;;  %v666_v16 = vld [vmem:[#allocation7 + $0x10] sm:$0xff]  ;;  %v665_v17 = vld [vmem:[#allocation7 + $0x8] sm:$0xff] }
  0x1d   :  { %270 = vmatpush.bf16.msra.mxu1 %v670_v3  ;;  %v664_v18 = vld [vmem:[#allocation7] sm:$0xff]  ;;  %v679_v19 = vld [vmem:[#allocation8 + $0x38] sm:$0xff]  ;;  %v678_v20 = vld [vmem:[#allocation8 + $0x30] sm:$0xff] }
  0x1e   :  { %356 = vmatpush.bf16.msra.mxu2 %v679_v19  ;;  %v677_v21 = vld [vmem:[#allocation8 + $0x28] sm:$0xff]  ;;  %v676_v22 = vld [vmem:[#allocation8 + $0x20] sm:$0xff]  ;;  %v703_v24 = vld [vmem:[%s974_s2] ss:$0 sm:$0xff] }
  0x1f   :  { %v675_v33 = vld [vmem:[#allocation8 + $0x18] sm:$0xff]  ;;  %v674_v34 = vld [vmem:[#allocation8 + $0x10] sm:$0xff]  ;;  %v673_v35 = vld [vmem:[#allocation8 + $0x8] sm:$0xff] }
  0x20   :  { %184 = vmatpush.bf16.msra.mxu0 %v661_v4  ;;  %v672_v36 = vld [vmem:[#allocation8] sm:$0xff]  ;;  %v687_v37 = vld [vmem:[#allocation10 + $0x38] sm:$0xff]  ;;  %v686_v38 = vld [vmem:[#allocation10 + $0x30] sm:$0xff] }
  0x21   :  { %271 = vmatpush.bf16.msra.mxu1 %v669_v5  ;;  %443 = vmatpush.bf16.msra.mxu3 %v687_v37  ;;  %v685_v39 = vld [vmem:[#allocation10 + $0x28] sm:$0xff]  ;;  %v684_v40 = vld [vmem:[#allocation10 + $0x20] sm:$0xff]  ;;  %v704_v42 = vld [vmem:[%s976_s4] ss:$0 sm:$0xff] }
  0x22   :  { %357 = vmatpush.bf16.msra.mxu2 %v678_v20  ;;  %v683_v51 = vld [vmem:[#allocation10 + $0x18] sm:$0xff]  ;;  %v682_v52 = vld [vmem:[#allocation10 + $0x10] sm:$0xff]  ;;  %v681_v53 = vld [vmem:[#allocation10 + $0x8] sm:$0xff] }
  0x23   :  { %v680_v54 = vld [vmem:[#allocation10] sm:$0xff]  ;;  %v705_v56 = vld [vmem:[%s978_s6] ss:$0 sm:$0xff]  ;;  %s876_s6 = smov [#allocation11]  }
  0x24   :  { %185 = vmatpush.bf16.msra.mxu0 %v660_v6  ;;  %v706_v1 = vld [vmem:[%s980_s8] ss:$0 sm:$0xff]  ;;  %s511_s8 = sshll.u32 %s876_s6, 4  ;;  %s512_s8 = int_to_ptr.vmem [resolvable:$true] %s511_s8 }
  0x25   :  { %272 = vmatpush.bf16.msra.mxu1 %v668_v7  ;;  %444 = vmatpush.bf16.msra.mxu3 %v686_v38 }
  0x26   :  { %358 = vmatpush.bf16.msra.mxu2 %v677_v21 }
  0x28   :  { %186 = vmatpush.bf16.msra.mxu0 %v659_v8 }
  0x29   :  { %273 = vmatpush.bf16.msra.mxu1 %v667_v15  ;;  %445 = vmatpush.bf16.msra.mxu3 %v685_v39 }
  0x2a   :  { %359 = vmatpush.bf16.msra.mxu2 %v676_v22 }
  0x2c   :  { %187 = vmatpush.bf16.msra.mxu0 %v658_v9 }
  0x2d   :  { %274 = vmatpush.bf16.msra.mxu1 %v666_v16  ;;  %446 = vmatpush.bf16.msra.mxu3 %v684_v40 }
  0x2e   :  { %360 = vmatpush.bf16.msra.mxu2 %v675_v33 }
  0x30   :  { %188 = vmatpush.bf16.msra.mxu0 %v657_v10 }
  0x31   :  { %275 = vmatpush.bf16.msra.mxu1 %v665_v17  ;;  %447 = vmatpush.bf16.msra.mxu3 %v683_v51 }
  0x32   :  { %361 = vmatpush.bf16.msra.mxu2 %v674_v34 }
  0x34   :  { %189 = vmatpush.bf16.msra.mxu0 %v656_v11 }
  0x35   :  { %276 = vmatpush.bf16.msra.mxu1 %v664_v18  ;;  %448 = vmatpush.bf16.msra.mxu3 %v682_v52 }
  0x36   :  { %362 = vmatpush.bf16.msra.mxu2 %v673_v35 }
  0x37   :  { %190 = vmatmul.bf16.vlgmr.msra.gmra.mxu0 %v113_v14 }
  0x39   :  { %449 = vmatpush.bf16.msra.mxu3 %v681_v53 }
  0x3a   :  { %363 = vmatpush.bf16.msra.mxu2 %v672_v36 }
  0x3d   :  { %450 = vmatpush.bf16.msra.mxu3 %v680_v54 }
  0xb4   :  { %v191_v23 = vpop.f32.mrf.mxu0 }
  0xb5   :  { %v192_v25 = vadd.f32 %v703_v24, %v191_v23 }
  0xb7   :  { %v196_v27 = vmul.f32 0.1, %v192_v25 }
  0xb9   :  { %v198_v30 = vmax.f32 %v192_v25, %v196_v27 }
  0xbc   :  { %v193_v26 = vpop.f32.mrf.mxu0 }
  0xbd   :  { %v194_v28 = vadd.f32 %v703_v24, %v193_v26 }
  0xbf   :  { %v197_v29 = vmul.f32 0.1, %v194_v28 }
  0xc1   :  { %v199_v31 = vmax.f32 %v194_v28, %v197_v29 }
  0xc3   :  { %v200_v32 = vpack.c.bf16 %v199_v31, %v198_v30 }
  0xc5   :  { %277 = vmatmul.bf16.vlgmr.msra.gmra.mxu1 %v200_v32 }
 0x142   :  { %v278_v41 = vpop.f32.mrf.mxu1 }
 0x143   :  { %v279_v43 = vadd.f32 %v704_v42, %v278_v41 }
 0x145   :  { %v283_v45 = vmul.f32 0.1, %v279_v43 }
 0x147   :  { %v285_v48 = vmax.f32 %v279_v43, %v283_v45 }
 0x14a   :  { %v280_v44 = vpop.f32.mrf.mxu1 }
 0x14b   :  { %v281_v46 = vadd.f32 %v704_v42, %v280_v44 }
 0x14d   :  { %v284_v47 = vmul.f32 0.1, %v281_v46 }
 0x14f   :  { %v286_v49 = vmax.f32 %v281_v46, %v284_v47 }
 0x151   :  { %v287_v50 = vpack.c.bf16 %v286_v49, %v285_v48 }
 0x153   :  { %364 = vmatmul.bf16.vlgmr.msra.gmra.mxu2 %v287_v50 }
 0x1d6   :  { %v365_v55 = vpop.f32.mrf.mxu2 }
 0x1d7   :  { %v366_v57 = vadd.f32 %v705_v56, %v365_v55 }
 0x1d9   :  { %v370_v59 = vmul.f32 0.1, %v366_v57 }
 0x1db   :  { %v372_v62 = vmax.f32 %v366_v57, %v370_v59 }
 0x1de   :  { %v367_v58 = vpop.f32.mrf.mxu2 }
 0x1df   :  { %v368_v60 = vadd.f32 %v705_v56, %v367_v58 }
 0x1e1   :  { %v371_v61 = vmul.f32 0.1, %v368_v60 }
 0x1e3   :  { %v373_v63 = vmax.f32 %v368_v60, %v371_v61 }
 0x1e5   :  { %v374_v0 = vpack.c.bf16 %v373_v63, %v372_v62 }
 0x1e7   :  { %451 = vmatmul.bf16.vlgmr.msra.gmra.mxu3 %v374_v0 }
 0x26a   :  { %v452_v2 = vpop.f32.mrf.mxu3 }
 0x26b   :  { %v453_v3 = vadd.f32 %v706_v1, %v452_v2 }
 0x26d   :  { %457 = vmax.xlane.f32.xlu0 %v453_v3 }
 0x272   :  { %v454_v4 = vpop.f32.mrf.mxu3 }
 0x273   :  { %v455_v5 = vadd.f32 %v706_v1, %v454_v4 }
 0x275   :  { %459 = vmax.xlane.f32.xlu0 %v455_v5 }
 0x2e0   :  { %v458_v6 = vpop.xlane.xlu0 %457 }
 0x2e1   :  { %v461_v7 = vsub.f32 %v453_v3, %v458_v6 }
 0x2e3   :  { %v463_v8 = vmul.f32 1.442695, %v461_v7 }
 0x2e5   :  { %707 = vpow2.f32 %v463_v8 }
 0x2e8   :  { %v460_v9 = vpop.xlane.xlu0 %459 }
 0x2e9   :  { %v462_v10 = vsub.f32 %v455_v5, %v460_v9 }
 0x2eb   :  { %v708_v11 = vpop.eup %707  ;;  %v465_v12 = vmul.f32 1.442695, %v462_v10 }
 0x2ec   :  { %467 = vadd.xlane.f32.xlu1 %v708_v11 }
 0x2ed   :  { %709 = vpow2.f32 %v465_v12 }
 0x2f3   :  { %v710_v13 = vpop.eup %709 }
 0x2f4   :  { %469 = vadd.xlane.f32.xlu1 %v710_v13 }
 0x35f   :  { %v468_v14 = vpop.xlane.xlu1 %467 }
 0x360   :  { %711 = vrcp.f32 %v468_v14  ;;  %v482_v23 = vand.u32 2147483648, %v468_v14  ;;  %vm476_vm1 = vweird.f32 %v468_v14  ;;  %v480_v24 = vand.u32 2147483647, %v468_v14 }
 0x362   :  { %v483_v30 = vor.u32 1.1754944e-38, %v482_v23  ;;  %vm481_vm4 = vcmp.eq.f32.partialorder %v480_v24, 8.507059e+37 }
 0x366   :  { %v712_v15 = vpop.eup %711 }
 0x367   :  { %v472_v16 = vmul.f32 %v712_v15, %v468_v14  ;;  %v470_v17 = vpop.xlane.xlu1 %469  ;;  %vm477_vm0 = vweird.f32 %v712_v15 }
 0x368   :  { %713 = vrcp.f32 %v470_v17  ;;  %vm478_vm2 = vmor %vm476_vm1, %vm477_vm0  ;;  %v497_v26 = vand.u32 2147483648, %v470_v17  ;;  %v495_v28 = vand.u32 2147483647, %v470_v17  ;;  %vm491_vm5 = vweird.f32 %v470_v17 }
 0x369   :  { %v473_v18 = vsub.f32 1.0, %v472_v16 }
 0x36a   :  { %v498_v32 = vor.u32 1.1754944e-38, %v497_v26  ;;  %vm496_vm7 = vcmp.eq.f32.partialorder %v495_v28, 8.507059e+37 }
 0x36b   :  { %v474_v19 = vmul.f32 %v712_v15, %v473_v18 }
 0x36d   :  { %v475_v21 = vadd.f32 %v712_v15, %v474_v19 }
 0x36e   :  { %v714_v20 = vpop.eup %713 }
 0x36f   :  { %v487_v22 = vmul.f32 %v714_v20, %v470_v17  ;;  %vm492_vm3 = vweird.f32 %v714_v20  ;;  %v479_v29 = vsel %vm478_vm2, %v712_v15, %v475_v21 }
 0x370   :  { %vm493_vm6 = vmor %vm491_vm5, %vm492_vm3  ;;  %v484_v33 = vsel %vm481_vm4, %v483_v30, %v479_v29 }
 0x371   :  { %v488_v25 = vsub.f32 1.0, %v487_v22  ;;  %v501_v36 = vmul.f32 %v708_v11, %v484_v33 }
 0x373   :  { %v489_v27 = vmul.f32 %v714_v20, %v488_v25 }
 0x375   :  { %v490_v31 = vadd.f32 %v714_v20, %v489_v27 }
 0x377   :  { %v494_v34 = vsel %vm493_vm6, %v714_v20, %v490_v31 }
 0x378   :  { %v499_v35 = vsel %vm496_vm7, %v498_v32, %v494_v34 }
 0x379   :  { %v502_v37 = vmul.f32 %v710_v13, %v499_v35 }
 0x37b   :  { %v691_v38 = vpack.c.bf16 %v502_v37, %v501_v36 }
 0x37d   :  { %692 = vst [vmem:[#allocation11] sm:$0xff] %v691_v38  }
 0x37e   :  { %519 = dma.vmem_to_hbm [thread:$0]  %s512_s8, 128, %s514_s1, [#allocation4], %s868_s17, %s868_s17, %s869_s18  }
 0x37f   :  { %865 = dma.done.wait [#allocation4], 128  }
 0x380   :  { %866 = vsyncadd [#allocation4], 4294967168 }
 0x381   :  { %524 = vsyncpa [#allocation3], 1 }
 0x382   :  { %525 = vsyncpa [#allocation6], 1 }
 0x383   :  { %526 = vsyncpa [#allocation9], 1 }
 0x384   :  { %527 = vsyncpa [#allocation4], 1 }

</bundles_post_ra>
